<compile_context>
chip_gen: v7x
topology: tpu7x:2x2x1
jax: 0.10.0
libtpu: 0.0.40
codegen_flags: <defaults>
</compile_context>

<pallas_src>
import functools

import jax
import jax.numpy as jnp
import numpy as np
from jax.experimental import pallas as pl
from jax.experimental.pallas import tpu as pltpu


def _residual_conv_kernel(xp_ref, wm_ref, b_ref, o_ref, *, TB, P, L2):
    """conv3x3(pad=1) + bias + identity residual on row-pair-packed slabs.

    xp_ref: (TB, P+2, L2)  input with one zero halo row-pair on each side;
                           lane axis = [2 image rows] x W x Cin, L2 = 2*W*C.
    wm_ref: (3, L2, L2)    block-banded weights per row-pair offset; the
                           identity residual is folded into wm_ref[1].
    b_ref : (1, L2)        bias tiled across (2 rows x W) on the lane axis.
    o_ref : (TB, P, L2)    output, same row-pair packing (P = H // 2).
    """
    acc = None
    # Sequential accumulation over the 3 row-pair taps: only one shifted
    # operand is live alongside the accumulator; each K=N=128 matmul fully
    # fills the MXU lanes.  The residual needs no extra operand (identity is
    # folded into the center tap's weight matrix).
    for t in range(3):
        xt = xp_ref[:, t:t + P, :].reshape(TB * P, L2)
        part = jnp.dot(xt, wm_ref[t], preferred_element_type=jnp.float32)
        acc = part if acc is None else acc + part
    out = acc + b_ref[...]                      # bias add on full 128-wide lanes
    o_ref[...] = out.reshape(TB, P, L2).astype(o_ref.dtype)


def make_residual_conv_params(weight, bias, H, W):
    """Fold conv weights into block-banded row-pair matrices ONCE (hoisted out
    of the forward path).

    M[t][r_in*W*C + w_in*C + ci, r_out*W*C + w_out*C + co] = weight[co,ci,kh,kw]
      with kh = 2*(t-1) + r_in - r_out + 1 and kw = w_in - w_out + 1
      (zero outside the 3-wide bands => implicit W zero-padding), plus the
      identity added to M[1] for the residual skip.
    """
    weight = np.asarray(weight, np.float32)
    bias = np.asarray(bias, np.float32)
    Cout, Cin, KH, KW = weight.shape
    assert (KH, KW) == (3, 3) and Cout == Cin, "identity skip needs Cout==Cin, 3x3"
    assert H % 2 == 0, "row-pair packing needs even H"

    taps = np.transpose(weight, (2, 3, 1, 0))            # (KH, KW, Cin, Cout)

    # W band indicator: kw tap connects w_in -> w_out iff w_in == w_out + kw - 1.
    Bw = np.zeros((KW, W, W), np.float32)
    for kw in range(KW):
        for w_out in range(W):
            w_in = w_out + kw - 1
            if 0 <= w_in < W:
                Bw[kw, w_in, w_out] = 1.0

    # Row-pair selector: input pair p+(t-1), in-pair row r_in feeds output
    # in-pair row r_out through kh = 2*(t-1) + r_in - r_out + 1.
    Sh = np.zeros((3, KH, 2, 2), np.float32)             # (t, kh, r_in, r_out)
    for t in range(3):
        for r_in in range(2):
            for r_out in range(2):
                kh = 2 * (t - 1) + r_in - r_out + 1
                if 0 <= kh < KH:
                    Sh[t, kh, r_in, r_out] = 1.0

    L2 = 2 * W * Cin
    M = np.einsum("thab,kxy,hkio->taxibyo", Sh, Bw, taps).reshape(3, L2, L2)
    M[1] += np.eye(L2, dtype=np.float32)                 # fold identity residual
    b2 = np.tile(bias, 2 * W).reshape(1, L2)
    return jnp.asarray(M), jnp.asarray(b2)


def _pick_batch_tile(N):
    # Keep >= 2 grid steps so v7x's 2 TensorCores get sharded work and the
    # input/output DMAs overlap compute.  For realistic N/H also target
    # TB*P >= ~512 rows per step (and add an H-strip grid axis) so the
    # ~0.35us/step pipeline overhead stays small.
    if N < 2:
        return 1
    tb = N // 2
    while N % tb:
        tb -= 1
    return tb


def residual_block(x_nchw, wm, b2):
    """Residual(block=Conv2d(C,C,3,pad=1), bypass=None).forward(x) on TPU.

    x_nchw : (N, C, H, W) float32
    wm, b2 : outputs of make_residual_conv_params(weight, bias, H, W)
    returns: (N, C, H, W) float32
    """
    # TODO(synk): only the bypass=None identity-skip path is implemented; a
    # generic `bypass` sub-module is arbitrary Python and has no Pallas form.
    N, C, H, W = x_nchw.shape
    assert H % 2 == 0, "row-pair packing needs even H"
    P = H // 2
    L2 = 2 * W * C
    assert wm.shape == (3, L2, L2) and b2.shape == (1, L2)

    # Layout glue (fused by XLA under jit): NCHW -> row-pair-packed
    # (N, H/2, 2*W*C) so the lane axis is >= 128, plus a one-pair zero halo in
    # H.  W zero-padding is implicit in the banded weight (no W pad at all).
    x_pack = jnp.transpose(x_nchw, (0, 2, 3, 1)).reshape(N, P, L2)
    xp = jnp.pad(x_pack, ((0, 0), (1, 1), (0, 0)))       # (N, P+2, L2)

    TB = _pick_batch_tile(N)
    kernel = functools.partial(_residual_conv_kernel, TB=TB, P=P, L2=L2)

    out_pack = pl.pallas_call(
        kernel,
        out_shape=jax.ShapeDtypeStruct((N, P, L2), x_nchw.dtype),
        grid_spec=pltpu.PrefetchScalarGridSpec(
            num_scalar_prefetch=0,
            grid=(N // TB,),
            in_specs=[
                pl.BlockSpec((TB, P + 2, L2), lambda n: (n, 0, 0)),
                # Weight / bias index maps are constant across the grid so they
                # are fetched once.  At realistic C, single-buffer them
                # (pipeline_mode=pl.Buffered(1)) and use per-tap K=Cin bf16
                # matmuls instead of this banded matrix (see header note).
                pl.BlockSpec((3, L2, L2), lambda n: (0, 0, 0)),
                pl.BlockSpec((1, L2), lambda n: (0, 0)),
            ],
            out_specs=pl.BlockSpec((TB, P, L2), lambda n: (n, 0, 0)),
        ),
        compiler_params=pltpu.CompilerParams(
            dimension_semantics=("parallel",),
            # Tiny footprint here; raise toward 64-96 MiB on v5e/v6e when
            # enlarging tiles, keep ~32-48 MiB on v7x (64 MiB physical VMEM).
            vmem_limit_bytes=32 * 1024 * 1024,
        ),
    )(xp, wm, b2)

    # Back to the module's NCHW interface.
    return jnp.transpose(out_pack.reshape(N, H, W, C), (0, 3, 1, 2))


def _reference(x_nchw, weight, bias):
    # Pure-JAX reference: conv3x3(pad=1) + bias + identity residual, NCHW.
    y = jax.lax.conv_general_dilated(
        x_nchw, weight,
        window_strides=(1, 1), padding=((1, 1), (1, 1)),
        dimension_numbers=("NCHW", "OIHW", "NCHW"))
    return y + bias.reshape(1, -1, 1, 1) + x_nchw


if __name__ == "__main__":
    key = jax.random.PRNGKey(0)
    kx, kwt, kb = jax.random.split(key, 3)

    N, C, H, W = 2, 4, 16, 16
    x = jax.random.normal(kx, (N, C, H, W), dtype=jnp.float32)
    weight = jax.random.normal(kwt, (C, C, 3, 3), dtype=jnp.float32) * 0.1
    bias = jax.random.normal(kb, (C,), dtype=jnp.float32) * 0.1

    # Parameter folding is done once (module init), not per forward call.
    wm, b2 = make_residual_conv_params(weight, bias, H, W)

    fwd = jax.jit(residual_block)
    out = jax.block_until_ready(fwd(x, wm, b2))
    ref = jax.block_until_ready(_reference(x, weight, bias))

    assert out.shape == (N, C, H, W)
    assert jnp.allclose(out, ref, atol=1e-4, rtol=1e-4), "mismatch vs reference"

    print("KERNEL_OK")
</pallas_src>

<mosaic_0001>
module attributes {stable_mosaic.version = 11 : i64} {
  func.func @_residual_conv_kernel(%arg0: i32, %arg1: memref<1x10x128xf32, #tpu.memory_space<vmem>>, %arg2: memref<3x128x128xf32, #tpu.memory_space<vmem>>, %arg3: memref<1x128xf32, #tpu.memory_space<vmem>>, %arg4: memref<1x8x128xf32, #tpu.memory_space<vmem>>) attributes {dimension_semantics = [#tpu.dimension_semantics<parallel>], iteration_bounds = array<i64: 2>, scalar_prefetch = 0 : i64, scratch_operands = 0 : i64, tpu.core_type = #tpu.core_type<tc>, window_params = [{transform_indices = @transform_0, window_bounds = array<i64: 1, 10, 128>}, {pipeline_mode = #tpu.pipeline_mode<synchronous>, transform_indices = @transform_1, window_bounds = array<i64: 3, 128, 128>}, {pipeline_mode = #tpu.pipeline_mode<synchronous>, transform_indices = @transform_2, window_bounds = array<i64: 1, 128>}, {transform_indices = @transform_3, window_bounds = array<i64: 1, 8, 128>}]} {
    %c0 = arith.constant 0 : index
    %c0_0 = arith.constant 0 : index
    %c0_1 = arith.constant 0 : index
    %0 = vector.load %arg1[%c0, %c0_0, %c0_1] : memref<1x10x128xf32, #tpu.memory_space<vmem>>, vector<1x8x128xf32>
    %1 = vector.shape_cast %0 : vector<1x8x128xf32> to vector<8x128xf32>
    %c0_2 = arith.constant 0 : index
    %c0_3 = arith.constant 0 : index
    %c0_4 = arith.constant 0 : index
    %2 = vector.load %arg2[%c0_2, %c0_3, %c0_4] : memref<3x128x128xf32, #tpu.memory_space<vmem>>, vector<1x128x128xf32>
    %3 = vector.shape_cast %2 : vector<1x128x128xf32> to vector<128x128xf32>
    %cst = arith.constant dense<0.000000e+00> : vector<8x128xf32>
    %4 = tpu.matmul %1, %3, %cst {dimension_numbers = #tpu.dot_dimension_numbers<[1], [0], [0], [1], [0, 0, 1, 1], [], []>} : vector<8x128xf32>, vector<128x128xf32>, vector<8x128xf32> -> vector<8x128xf32>
    %c0_5 = arith.constant 0 : index
    %c1 = arith.constant 1 : index
    %c0_6 = arith.constant 0 : index
    %5 = vector.load %arg1[%c0_5, %c1, %c0_6] : memref<1x10x128xf32, #tpu.memory_space<vmem>>, vector<1x8x128xf32>
    %6 = vector.shape_cast %5 : vector<1x8x128xf32> to vector<8x128xf32>
    %c1_7 = arith.constant 1 : index
    %c0_8 = arith.constant 0 : index
    %c0_9 = arith.constant 0 : index
    %7 = vector.load %arg2[%c1_7, %c0_8, %c0_9] : memref<3x128x128xf32, #tpu.memory_space<vmem>>, vector<1x128x128xf32>
    %8 = vector.shape_cast %7 : vector<1x128x128xf32> to vector<128x128xf32>
    %cst_10 = arith.constant dense<0.000000e+00> : vector<8x128xf32>
    %9 = tpu.matmul %6, %8, %cst_10 {dimension_numbers = #tpu.dot_dimension_numbers<[1], [0], [0], [1], [0, 0, 1, 1], [], []>} : vector<8x128xf32>, vector<128x128xf32>, vector<8x128xf32> -> vector<8x128xf32>
    %10 = arith.addf %4, %9 : vector<8x128xf32>
    %c0_11 = arith.constant 0 : index
    %c2 = arith.constant 2 : index
    %c0_12 = arith.constant 0 : index
    %11 = vector.load %arg1[%c0_11, %c2, %c0_12] : memref<1x10x128xf32, #tpu.memory_space<vmem>>, vector<1x8x128xf32>
    %12 = vector.shape_cast %11 : vector<1x8x128xf32> to vector<8x128xf32>
    %c2_13 = arith.constant 2 : index
    %c0_14 = arith.constant 0 : index
    %c0_15 = arith.constant 0 : index
    %13 = vector.load %arg2[%c2_13, %c0_14, %c0_15] : memref<3x128x128xf32, #tpu.memory_space<vmem>>, vector<1x128x128xf32>
    %14 = vector.shape_cast %13 : vector<1x128x128xf32> to vector<128x128xf32>
    %cst_16 = arith.constant dense<0.000000e+00> : vector<8x128xf32>
    %15 = tpu.matmul %12, %14, %cst_16 {dimension_numbers = #tpu.dot_dimension_numbers<[1], [0], [0], [1], [0, 0, 1, 1], [], []>} : vector<8x128xf32>, vector<128x128xf32>, vector<8x128xf32> -> vector<8x128xf32>
    %16 = arith.addf %10, %15 : vector<8x128xf32>
    %c0_17 = arith.constant 0 : index
    %c0_18 = arith.constant 0 : index
    %17 = vector.load %arg3[%c0_17, %c0_18] : memref<1x128xf32, #tpu.memory_space<vmem>>, vector<1x128xf32>
    %18 = vector.broadcast %17 : vector<1x128xf32> to vector<8x128xf32>
    %19 = arith.addf %16, %18 : vector<8x128xf32>
    %20 = vector.shape_cast %19 : vector<8x128xf32> to vector<1x8x128xf32>
    %c0_19 = arith.constant 0 : index
    %c0_20 = arith.constant 0 : index
    %c0_21 = arith.constant 0 : index
    %21 = vector.load %arg4[%c0_19, %c0_20, %c0_21] : memref<1x8x128xf32, #tpu.memory_space<vmem>>, vector<1x8x128xf32>
    tpu.vector_store %arg4[%c0_19, %c0_20, %c0_21], %20 {strides = array<i32>} : memref<1x8x128xf32, #tpu.memory_space<vmem>>, vector<1x8x128xf32>,
    return
  }
  func.func @transform_0(%arg0: i32) -> (i32, i32, i32) {
    %c0_i32 = arith.constant 0 : i32
    %c0_i32_0 = arith.constant 0 : i32
    %c0_i32_1 = arith.constant 0 : i32
    return %arg0, %c0_i32, %c0_i32_0 : i32, i32, i32
  }
  func.func @transform_1(%arg0: i32) -> (i32, i32, i32) {
    %c0_i32 = arith.constant 0 : i32
    %c0_i32_0 = arith.constant 0 : i32
    %c0_i32_1 = arith.constant 0 : i32
    %c0_i32_2 = arith.constant 0 : i32
    return %c0_i32, %c0_i32_0, %c0_i32_1 : i32, i32, i32
  }
  func.func @transform_2(%arg0: i32) -> (i32, i32) {
    %c0_i32 = arith.constant 0 : i32
    %c0_i32_0 = arith.constant 0 : i32
    %c0_i32_1 = arith.constant 0 : i32
    return %c0_i32, %c0_i32_0 : i32, i32
  }
  func.func @transform_3(%arg0: i32) -> (i32, i32, i32) {
    %c0_i32 = arith.constant 0 : i32
    %c0_i32_0 = arith.constant 0 : i32
    %c0_i32_1 = arith.constant 0 : i32
    return %arg0, %c0_i32, %c0_i32_0 : i32, i32, i32
  }
}

</mosaic_0001>

<bundles_post_ra>
// kernel: residual_block.1
= control target key start
LH: loop header
LB: loop body
LE: loop exit
PB: predicated region body
PF: predicated region fallthrough
CT: control target
= control target key end

     0   :  { %s809_s12 = smov 0   ;;  %s1016_s0 = inlined_call_operand.vmem [shape: f32[2,10,128], index: 0, kind: input, shape index: {}]   ;;  %s1017_s1 = inlined_call_operand.vmem [shape: f32[3,128,128], index: 1, kind: input, shape index: {}]   ;;  %s1018_s2 = inlined_call_operand.vmem [shape: f32[1,128], index: 2, kind: input, shape index: {}]   ;;  %s1019_s3 = inlined_call_operand.vmem [shape: f32[2,8,128], index: 3, kind: output, shape index: {}]  }
   0x1 LB: > { %s495_s13 = sadd.s32 4294967295, %s784_s12   ;;  %p499_p0 = scmp.ge.s32.totalorder %s784_s12, 1  ;;  %s784_s12 = sphi %s809_s12, %s13_s12  }
   0x2   : > { %p137_p1 = scmp.lt.s32.totalorder %s784_s12, 3 }
   0x4   : > { %p138_p2 = pnand %p499_p0, %p137_p1 }
   0x5   : > { %v503_v0 = vld [vmem:[%s1017_s1 + $0x80] sm:$0xff] (!%p138_p2)  ;;  %v504_v1 = vld [vmem:[%s1017_s1 + $0x88] sm:$0xff] (!%p138_p2)  ;;  %v786_v3 = vmov (!%p138_p2), 0.0|0.0   ;;  %v505_v6 = vld [vmem:[%s1017_s1 + $0x90] sm:$0xff] (!%p138_p2)  ;;  %vm787_vm0 = vmmov (!%p138_p2), 0   ;;  %v788_v11 = vmov (!%p138_p2), 0.0  }
   0x6   : > { %141 = sbr.rel (%p138_p2) target bundleno = 288 (0x120), region = 32  ;;  %v170_v2 = vld [vmem:[%s1017_s1] sm:$0xff] (!%p138_p2)  ;;  %695 = vmatprep.subr.bf16.mxu0 (!%p138_p2), %v786_v3  ;;  %v696_v4 = vpack.c.bf16 (!%p138_p2), %v504_v1, %v503_v0  ;;  %719 = vmatprep.subr.bf16.mxu1 (!%p138_p2), %v786_v3  ;;  %v171_v5 = vld [vmem:[%s1017_s1 + $0x8] sm:$0xff] (!%p138_p2)  ;;  %v506_v7 = vld [vmem:[%s1017_s1 + $0x98] sm:$0xff] (!%p138_p2)  ;;  %p160_p3 = scmp.lt.s32.totalorder (!%p138_p2), %s495_s13, 1 }
   0x7   : > { %v720_v8 = vpack.c.bf16 (!%p138_p2), %v171_v5, %v170_v2  ;;  %v172_v9 = vld [vmem:[%s1017_s1 + $0x10] sm:$0xff] (!%p138_p2)  ;;  %v173_v10 = vld [vmem:[%s1017_s1 + $0x18] sm:$0xff] (!%p138_p2)  ;;  %622 = vmatprep.mubr.msk.f32.mxu0 (!%p138_p2), %vm787_vm0, %v788_v11  ;;  %657 = vmatprep.mubr.msk.f32.mxu1 (!%p138_p2), %vm787_vm0, %v788_v11  ;;  %v699_v12 = vpack.c.bf16 (!%p138_p2), %v506_v7, %v505_v6  ;;  %v507_v14 = vld [vmem:[%s1017_s1 + $0xa0] sm:$0xff] (!%p138_p2) }
   0x8   : > { %697 = vmatpush3.bf16.msra.mxu0 (!%p138_p2), %v696_v4  ;;  %v723_v13 = vpack.c.bf16 (!%p138_p2), %v173_v10, %v172_v9  ;;  %v508_v15 = vld [vmem:[%s1017_s1 + $0xa8] sm:$0xff] (!%p138_p2)  ;;  %v174_v16 = vld [vmem:[%s1017_s1 + $0x20] sm:$0xff] (!%p138_p2)  ;;  %v509_v20 = vld [vmem:[%s1017_s1 + $0xb0] sm:$0xff] (!%p138_p2) }
   0x9   : > { %721 = vmatpush3.bf16.msra.mxu1 (!%p138_p2), %v720_v8  ;;  %698 = vmatprep.subr.bf16.mxu0 (!%p138_p2), %v786_v3  ;;  %v175_v17 = vld [vmem:[%s1017_s1 + $0x28] sm:$0xff] (!%p138_p2)  ;;  %v702_v18 = vpack.c.bf16 (!%p138_p2), %v508_v15, %v507_v14  ;;  %v510_v21 = vld [vmem:[%s1017_s1 + $0xb8] sm:$0xff] (!%p138_p2)  ;;  %v176_v22 = vld [vmem:[%s1017_s1 + $0x30] sm:$0xff] (!%p138_p2) }
   0xa   : > { %722 = vmatprep.subr.bf16.mxu1 (!%p138_p2), %v786_v3  ;;  %v726_v19 = vpack.c.bf16 (!%p138_p2), %v175_v17, %v174_v16  ;;  %v177_v23 = vld [vmem:[%s1017_s1 + $0x38] sm:$0xff] (!%p138_p2)  ;;  %v705_v24 = vpack.c.bf16 (!%p138_p2), %v510_v21, %v509_v20  ;;  %v511_v26 = vld [vmem:[%s1017_s1 + $0xc0] sm:$0xff] (!%p138_p2)  ;;  %v512_v27 = vld [vmem:[%s1017_s1 + $0xc8] sm:$0xff] (!%p138_p2) }
   0xb   : > { %v729_v25 = vpack.c.bf16 (!%p138_p2), %v177_v23, %v176_v22  ;;  %v178_v28 = vld [vmem:[%s1017_s1 + $0x40] sm:$0xff] (!%p138_p2)  ;;  %v179_v29 = vld [vmem:[%s1017_s1 + $0x48] sm:$0xff] (!%p138_p2)  ;;  %v708_v30 = vpack.c.bf16 (!%p138_p2), %v512_v27, %v511_v26  ;;  %v513_v32 = vld [vmem:[%s1017_s1 + $0xd0] sm:$0xff] (!%p138_p2) }
   0xc   : > { %700 = vmatpush3.bf16.msra.mxu0 (!%p138_p2), %v699_v12  ;;  %v732_v31 = vpack.c.bf16 (!%p138_p2), %v179_v29, %v178_v28  ;;  %v514_v33 = vld [vmem:[%s1017_s1 + $0xd8] sm:$0xff] (!%p138_p2)  ;;  %v180_v34 = vld [vmem:[%s1017_s1 + $0x50] sm:$0xff] (!%p138_p2)  ;;  %v515_v38 = vld [vmem:[%s1017_s1 + $0xe0] sm:$0xff] (!%p138_p2) }
   0xd   : > { %724 = vmatpush3.bf16.msra.mxu1 %v723_v13  ;;  %701 = vmatprep.subr.bf16.mxu0 %v786_v3  ;;  %v181_v35 = vld [vmem:[%s1017_s1 + $0x58] sm:$0xff]  ;;  %v711_v36 = vpack.c.bf16 %v514_v33, %v513_v32  ;;  %v516_v39 = vld [vmem:[%s1017_s1 + $0xe8] sm:$0xff]  ;;  %v182_v40 = vld [vmem:[%s1017_s1 + $0x60] sm:$0xff]  ;;  %s1021_s13 = smov (!%p160_p3, %s495_s13), 1 }
   0xe   : > { %725 = vmatprep.subr.bf16.mxu1 %v786_v3  ;;  %v735_v37 = vpack.c.bf16 %v181_v35, %v180_v34  ;;  %v183_v41 = vld [vmem:[%s1017_s1 + $0x68] sm:$0xff]  ;;  %v714_v42 = vpack.c.bf16 %v516_v39, %v515_v38  ;;  %v517_v44 = vld [vmem:[%s1017_s1 + $0xf0] sm:$0xff]  ;;  %v518_v45 = vld [vmem:[%s1017_s1 + $0xf8] sm:$0xff]  ;;  %s538_s28 = sshll.u32 %s1021_s13, 4  ;;  %s502_s15 = sshll.u32 %s1021_s13, 3 }
   0xf   : > { %v738_v43 = vpack.c.bf16 %v183_v41, %v182_v40  ;;  %v184_v46 = vld [vmem:[%s1017_s1 + $0x70] sm:$0xff]  ;;  %v185_v47 = vld [vmem:[%s1017_s1 + $0x78] sm:$0xff]  ;;  %v717_v48 = vpack.c.bf16 %v518_v45, %v517_v44  ;;  %s942_s4 = scalar_lea.vmem %s1016_s0, %s538_s28  ;;  %v519_v50 = vld [vmem:[%s1017_s1 + $0x100] sm:$0xff]  ;;  %s168_s20 = scalar_lea.vmem %s1019_s3, %s502_s15 }
  0x10   : > { %703 = vmatpush3.bf16.msra.mxu0 %v702_v18  ;;  %v741_v49 = vpack.c.bf16 %v185_v47, %v184_v46  ;;  %v520_v51 = vld [vmem:[%s1017_s1 + $0x108] sm:$0xff]  ;;  %v169_v54 = vld [vmem:[%s942_s4] sm:$0xff]  ;;  %v521_v55 = vld [vmem:[%s1017_s1 + $0x110] sm:$0xff] }
  0x11   : > { %727 = vmatpush3.bf16.msra.mxu1 %v726_v19  ;;  %704 = vmatprep.subr.bf16.mxu0 %v786_v3  ;;  %v186_v52 = vld [vmem:[%s942_s4 + $0x1] sm:$0xff]  ;;  %v744_v53 = vpack.c.bf16 %v520_v51, %v519_v50  ;;  %v522_v56 = vld [vmem:[%s1017_s1 + $0x118] sm:$0xff]  ;;  %v525_v61 = vld [vmem:[%s1017_s1 + $0x130] sm:$0xff] }
  0x12   : > { %728 = vmatprep.subr.bf16.mxu1 %v786_v3  ;;  %v747_v57 = vpack.c.bf16 %v522_v56, %v521_v55  ;;  %v523_v58 = vld [vmem:[%s1017_s1 + $0x120] sm:$0xff]  ;;  %v524_v59 = vld [vmem:[%s1017_s1 + $0x128] sm:$0xff]  ;;  %v526_v62 = vld [vmem:[%s1017_s1 + $0x138] sm:$0xff] }
  0x13   : > { %v750_v60 = vpack.c.bf16 %v524_v59, %v523_v58  ;;  %v753_v63 = vpack.c.bf16 %v526_v62, %v525_v61  ;;  %v527_v0 = vld [vmem:[%s1017_s1 + $0x140] sm:$0xff]  ;;  %v528_v1 = vld [vmem:[%s1017_s1 + $0x148] sm:$0xff]  ;;  %v529_v4 = vld [vmem:[%s1017_s1 + $0x150] sm:$0xff] }
  0x14   : > { %706 = vmatpush3.bf16.msra.mxu0 %v705_v24  ;;  %v756_v2 = vpack.c.bf16 %v528_v1, %v527_v0  ;;  %v530_v5 = vld [vmem:[%s1017_s1 + $0x158] sm:$0xff]  ;;  %v531_v7 = vld [vmem:[%s1017_s1 + $0x160] sm:$0xff]  ;;  %v532_v8 = vld [vmem:[%s1017_s1 + $0x168] sm:$0xff] }
  0x15   : > { %730 = vmatpush3.bf16.msra.mxu1 %v729_v25  ;;  %707 = vmatprep.subr.bf16.mxu0 %v786_v3  ;;  %v759_v6 = vpack.c.bf16 %v530_v5, %v529_v4  ;;  %v762_v9 = vpack.c.bf16 %v532_v8, %v531_v7  ;;  %v533_v10 = vld [vmem:[%s1017_s1 + $0x170] sm:$0xff]  ;;  %v344_v13 = vld [vmem:[%s942_s4 + $0x2] sm:$0xff]  ;;  %v535_v20 = vld [vmem:[%s1018_s2] ss:$0 sm:$0xff] }
  0x16   : > { %731 = vmatprep.subr.bf16.mxu1 %v786_v3 }
  0x18   : > { %709 = vmatpush3.bf16.msra.mxu0 %v708_v30 }
  0x19   : > { %733 = vmatpush3.bf16.msra.mxu1 %v732_v31  ;;  %710 = vmatprep.subr.bf16.mxu0 %v786_v3 }
  0x1a   : > { %734 = vmatprep.subr.bf16.mxu1 %v786_v3 }
  0x1c   : > { %712 = vmatpush3.bf16.msra.mxu0 %v711_v36 }
  0x1d   : > { %736 = vmatpush3.bf16.msra.mxu1 %v735_v37  ;;  %713 = vmatprep.subr.bf16.mxu0 %v786_v3 }
  0x1e   : > { %737 = vmatprep.subr.bf16.mxu1 %v786_v3 }
  0x20   : > { %715 = vmatpush3.bf16.msra.mxu0 %v714_v42 }
  0x21   : > { %739 = vmatpush3.bf16.msra.mxu1 %v738_v43  ;;  %716 = vmatprep.subr.bf16.mxu0 %v786_v3 }
  0x22   : > { %740 = vmatprep.subr.bf16.mxu1 %v786_v3 }
  0x24   : > { %718 = vmatpush3.bf16.msra.mxu0 %v717_v48 }
  0x25   : > { %742 = vmatpush3.bf16.msra.mxu1 %v741_v49  ;;  %743 = vmatprep.subr.bf16.mxu0 %v786_v3 }
  0x27   : > { %623 = vmatmul.mubr.f32.vlgmr.msra.gmra.mrb[0].mxu0 %v186_v52 }
  0x28   : > { %658 = vmatmul.mubr.f32.vlgmr.msra.gmra.mrb[0].mxu1 %v169_v54  ;;  %745 = vmatpush3.bf16.msra.mxu0 %v744_v53 }
  0x29   : > { %746 = vmatprep.subr.bf16.mxu0 %v786_v3  ;;  %692 = vmatprep.mubr.msk.f32.mxu0 %vm787_vm0, %v788_v11  ;;  %v534_v11 = vld [vmem:[%s1017_s1 + $0x178] sm:$0xff] }
  0x2a   : > { %v765_v12 = vpack.c.bf16 %v534_v11, %v533_v10 }
  0x2c   : > { %748 = vmatpush3.bf16.msra.mxu0 %v747_v57 }
  0x2d   : > { %749 = vmatprep.subr.bf16.mxu0 %v786_v3 }
  0x30   : > { %751 = vmatpush3.bf16.msra.mxu0 %v750_v60 }
  0x31   : > { %752 = vmatprep.subr.bf16.mxu0 %v786_v3 }
  0x34   : > { %754 = vmatpush3.bf16.msra.mxu0 %v753_v63 }
  0x35   : > { %755 = vmatprep.subr.bf16.mxu0 %v786_v3 }
  0x38   : > { %757 = vmatpush3.bf16.msra.mxu0 %v756_v2 }
  0x39   : > { %758 = vmatprep.subr.bf16.mxu0 %v786_v3 }
  0x3c   : > { %760 = vmatpush3.bf16.msra.mxu0 %v759_v6 }
  0x3d   : > { %761 = vmatprep.subr.bf16.mxu0 %v786_v3 }
  0x40   : > { %763 = vmatpush3.bf16.msra.mxu0 %v762_v9 }
  0x41   : > { %764 = vmatprep.subr.bf16.mxu0 %v786_v3 }
  0x44   : > { %766 = vmatpush3.bf16.msra.mxu0 %v765_v12 }
  0x47   : > { %693 = vmatmul.mubr.f32.vlgmr.msra.gmra.mrb[2].mxu0 %v344_v13 }
  0xfa   : > { %v270_v14 = vpop.f32.mrb[0].mxu0 }
  0xfb   : > { %v624_v15 = vpop.f32.mrb[1].mxu0  ;;  %v340_v16 = vpop.f32.mrb[0].mxu1 }
  0xfc   : > { %v341_v17 = vadd.f32 %v340_v16, %v270_v14  ;;  %v659_v18 = vpop.f32.mrb[1].mxu1 }
 0x11a   : > { %v428_v19 = vpop.f32.mrb[2].mxu0 }
 0x11b   : > { %v432_v21 = vadd.f32 %v428_v19, %v341_v17  ;;  %v694_v22 = vpop.f32.mrb[3].mxu0 }
 0x11d   : > { %v440_v3 = vadd.f32 %v535_v20, %v432_v21 }
 0x11f   : > { %441 = vst [vmem:[%s168_s20] sm:$0xff] %v440_v3 }
 0x120 PF: > { %s13_s12 = sadd.s32 1, %s784_s12  }
 0x121   : > { %p10_p4 = scmp.ge.s32.totalorder %s13_s12, 4  }
 0x123   :  { %12 = sbr.rel (!%p10_p4) target bundleno = 1 (0x1), region = 64 }

</bundles_post_ra>
